<compile_context>
chip_gen: v6e
topology: v6e:2x2x1
jax: 0.10.0
libtpu: 0.0.40
codegen_flags: <defaults>
</compile_context>

<pallas_src>
import functools

import jax
import jax.numpy as jnp
from jax.experimental import pallas as pl
from jax.experimental.pallas import tpu as pltpu


_MXU_DTYPE = jnp.bfloat16   # MXU operand dtype; accumulation stays f32.


# ----------------------------- fused Pallas kernel -----------------------------

def _knet_fused_kernel(x_ref, gate_ref, w_loc_ref, b_loc_ref, kern_ref,
                       w_up_ref, b_up_ref, o_ref, *, num_stages):
    # x:     (1, Cin, HW)          gate:  (1, C, 1)
    # w_loc: (C, Cin)              b_loc: (C, 1)
    # kern:  (N, C)                w_up:  (S, C, C)      b_up: (S, 1, C)
    # o:     (1, S+1, N, HW)

    # ---- ConvKernelHead: 1x1 conv + ReLU + language FiLM gate (all f32) ----
    x = x_ref[0]                                                    # (Cin, HW)
    y = jnp.dot(w_loc_ref[...], x,
                preferred_element_type=jnp.float32) + b_loc_ref[...]
    x_feats_f32 = jnp.maximum(y, 0.0) * gate_ref[0]                 # (C, HW) f32
    x_feats = x_feats_f32.astype(_MXU_DTYPE)                        # MXU operand

    # ---- initial mask prediction ----
    prop = kern_ref[...]                                            # (N, C) f32
    mask = jnp.dot(prop.astype(_MXU_DTYPE), x_feats,
                   preferred_element_type=jnp.float32)              # (N, HW) f32
    o_ref[0, 0] = mask

    # ---- KernelIterHead: statically unrolled stage loop (short, fixed) ----
    # TODO(synk): full KernelUpdateHead (multi-head attention + FFN +
    # point-sampled losses over num_points) is not reproducible from the
    # snippet; the gather -> kernel-update -> mask-predict structure is kept.
    for s in range(num_stages):
        # sigmoid-weighted feature gather: contract HW on both operands
        m = jax.nn.sigmoid(mask).astype(_MXU_DTYPE)                 # (N, HW)
        gathered = jax.lax.dot_general(
            m, x_feats,
            dimension_numbers=(((1,), (1,)), ((), ())),
            preferred_element_type=jnp.float32)                     # (N, C) f32

        # kernel update: linear + tanh residual (elementwise in f32)
        upd = jnp.dot(gathered.astype(_MXU_DTYPE),
                      w_up_ref[s].astype(_MXU_DTYPE),
                      preferred_element_type=jnp.float32) + b_up_ref[s]
        prop = prop + jnp.tanh(upd)                                 # (N, C) f32

        # new mask prediction
        mask = jnp.dot(prop.astype(_MXU_DTYPE), x_feats,
                       preferred_element_type=jnp.float32)          # (N, HW)
        o_ref[0, s + 1] = mask


# ----------------------------- pallas_call wrapper -----------------------------

def knet_masks(params, x_flat, gate, num_stages):
    """x_flat: (B, Cin, HW); gate: (B, C, 1). Returns (B, S+1, N, HW) logits."""
    B, Cin, HW = x_flat.shape
    N, C = params["init_kernels"].shape
    S = num_stages

    return pl.pallas_call(
        functools.partial(_knet_fused_kernel, num_stages=S),
        out_shape=jax.ShapeDtypeStruct((B, S + 1, N, HW), jnp.float32),
        grid_spec=pltpu.PrefetchScalarGridSpec(
            num_scalar_prefetch=0, grid=(B,),
            in_specs=[
                pl.BlockSpec((1, Cin, HW), lambda i: (i, 0, 0)),   # x
                pl.BlockSpec((1, C, 1), lambda i: (i, 0, 0)),      # gate
                pl.BlockSpec((C, Cin), lambda i: (0, 0)),          # w_loc
                pl.BlockSpec((C, 1), lambda i: (0, 0)),            # b_loc
                pl.BlockSpec((N, C), lambda i: (0, 0)),            # init_kernels
                pl.BlockSpec((S, C, C), lambda i: (0, 0, 0)),      # w_up (stacked)
                pl.BlockSpec((S, 1, C), lambda i: (0, 0, 0)),      # b_up (stacked)
            ],
            out_specs=pl.BlockSpec((1, S + 1, N, HW),
                                   lambda i: (i, 0, 0, 0)),
        ),
        compiler_params=pltpu.CompilerParams(
            dimension_semantics=("parallel",)),                    # v7x: 2 TCs
    )(x_flat, gate, params["w_loc"], params["b_loc"],
      params["init_kernels"], params["w_up"], params["b_up"])


# ----------------------------- parameters & forward -----------------------------

def init_knet_params(key, c_in, c_hidden, lang_dim, num_proposals, num_stages):
    ks = jax.random.split(key, 7)
    return {
        "w_loc": 0.1 * jax.random.normal(ks[0], (c_hidden, c_in), jnp.float32),
        "b_loc": 0.01 * jax.random.normal(ks[1], (c_hidden, 1), jnp.float32),
        "w_lang": 0.1 * jax.random.normal(ks[2], (c_hidden, lang_dim), jnp.float32),
        "b_lang": 0.01 * jax.random.normal(ks[3], (c_hidden,), jnp.float32),
        "init_kernels": 0.1 * jax.random.normal(
            ks[4], (num_proposals, c_hidden), jnp.float32),
        # stacked per-stage kernel-update weights
        "w_up": 0.1 * jax.random.normal(
            ks[5], (num_stages, c_hidden, c_hidden), jnp.float32),
        "b_up": 0.01 * jax.random.normal(
            ks[6], (num_stages, 1, c_hidden), jnp.float32),
    }


def knet_forward(params, x, lang_feat, num_stages):
    """x: (B, C_in, H, W) NCHW; lang_feat: (B, L, D). Returns list of
    (B, N, H, W) mask logits: [rpn masks] + num_stages iterated masks."""
    B, Cin, H, W = x.shape
    HW = H * W
    N = params["init_kernels"].shape[0]
    x_flat = x.reshape(B, Cin, HW)

    # tiny pooled language projection is glue; the FiLM gate itself is fused
    lang_pool = jnp.mean(lang_feat, axis=1)                             # (B, D)
    gate = jax.nn.sigmoid(lang_pool @ params["w_lang"].T + params["b_lang"])
    gate = gate[:, :, None].astype(jnp.float32)                         # (B, C, 1)

    masks = knet_masks(params, x_flat, gate, num_stages)                # (B,S+1,N,HW)
    return [masks[:, s].reshape(B, N, H, W) for s in range(num_stages + 1)]


# ----------------------------- main -----------------------------

if __name__ == "__main__":
    B, C_IN, H, W = 2, 4, 16, 16
    L, D_LANG = 8, 16
    C_HIDDEN = 32
    NUM_PROPOSALS = 8       # small stand-in for num_points=100 proposal kernels
    NUM_STAGES = 3

    key = jax.random.PRNGKey(0)
    kx, kl, kp = jax.random.split(key, 3)
    x = jax.random.normal(kx, (B, C_IN, H, W), jnp.float32)
    lang_feat = jax.random.normal(kl, (B, L, D_LANG), jnp.float32)
    params = init_knet_params(kp, C_IN, C_HIDDEN, D_LANG, NUM_PROPOSALS, NUM_STAGES)

    masks = knet_forward(params, x, lang_feat, NUM_STAGES)
    masks = [jax.block_until_ready(m) for m in masks]

    assert len(masks) == 1 + NUM_STAGES
    for m in masks:
        assert m.shape == (B, NUM_PROPOSALS, H, W)
        assert bool(jnp.all(jnp.isfinite(m)))
    print("KERNEL_OK")
</pallas_src>

<mosaic_0001>
module attributes {stable_mosaic.version = 11 : i64} {
  func.func @_knet_fused_kernel(%arg0: i32, %arg1: memref<1x4x256xf32, #tpu.memory_space<vmem>>, %arg2: memref<1x32x1xf32, #tpu.memory_space<vmem>>, %arg3: memref<32x4xf32, #tpu.memory_space<vmem>>, %arg4: memref<32x1xf32, #tpu.memory_space<vmem>>, %arg5: memref<8x32xf32, #tpu.memory_space<vmem>>, %arg6: memref<3x32x32xf32, #tpu.memory_space<vmem>>, %arg7: memref<3x1x32xf32, #tpu.memory_space<vmem>>, %arg8: memref<1x4x8x256xf32, #tpu.memory_space<vmem>>) attributes {dimension_semantics = [#tpu.dimension_semantics<parallel>], iteration_bounds = array<i64: 2>, scalar_prefetch = 0 : i64, scratch_operands = 0 : i64, tpu.core_type = #tpu.core_type<tc>, window_params = [{transform_indices = @transform_0, window_bounds = array<i64: 1, 4, 256>}, {transform_indices = @transform_1, window_bounds = array<i64: 1, 32, 1>}, {pipeline_mode = #tpu.pipeline_mode<synchronous>, transform_indices = @transform_2, window_bounds = array<i64: 32, 4>}, {pipeline_mode = #tpu.pipeline_mode<synchronous>, transform_indices = @transform_3, window_bounds = array<i64: 32, 1>}, {pipeline_mode = #tpu.pipeline_mode<synchronous>, transform_indices = @transform_4, window_bounds = array<i64: 8, 32>}, {pipeline_mode = #tpu.pipeline_mode<synchronous>, transform_indices = @transform_5, window_bounds = array<i64: 3, 32, 32>}, {pipeline_mode = #tpu.pipeline_mode<synchronous>, transform_indices = @transform_6, window_bounds = array<i64: 3, 1, 32>}, {transform_indices = @transform_7, window_bounds = array<i64: 1, 4, 8, 256>}]} {
    %c0 = arith.constant 0 : index
    %c0_0 = arith.constant 0 : index
    %c0_1 = arith.constant 0 : index
    %0 = vector.load %arg1[%c0, %c0_0, %c0_1] : memref<1x4x256xf32, #tpu.memory_space<vmem>>, vector<1x4x256xf32>
    %1 = vector.shape_cast %0 : vector<1x4x256xf32> to vector<4x256xf32>
    %c0_2 = arith.constant 0 : index
    %c0_3 = arith.constant 0 : index
    %2 = vector.load %arg3[%c0_2, %c0_3] : memref<32x4xf32, #tpu.memory_space<vmem>>, vector<32x4xf32>
    %cst = arith.constant dense<0.000000e+00> : vector<32x256xf32>
    %3 = tpu.matmul %2, %1, %cst {dimension_numbers = #tpu.dot_dimension_numbers<[1], [0], [0], [1], [0, 0, 1, 1], [], []>} : vector<32x4xf32>, vector<4x256xf32>, vector<32x256xf32> -> vector<32x256xf32>
    %c0_4 = arith.constant 0 : index
    %c0_5 = arith.constant 0 : index
    %4 = vector.load %arg4[%c0_4, %c0_5] : memref<32x1xf32, #tpu.memory_space<vmem>>, vector<32x1xf32>
    %5 = vector.broadcast %4 : vector<32x1xf32> to vector<32x256xf32>
    %6 = arith.addf %3, %5 : vector<32x256xf32>
    %cst_6 = arith.constant 0.000000e+00 : f32
    %7 = vector.broadcast %cst_6 : f32 to vector<32x256xf32>
    %8 = arith.maximumf %6, %7 : vector<32x256xf32>
    %c0_7 = arith.constant 0 : index
    %c0_8 = arith.constant 0 : index
    %c0_9 = arith.constant 0 : index
    %9 = vector.load %arg2[%c0_7, %c0_8, %c0_9] : memref<1x32x1xf32, #tpu.memory_space<vmem>>, vector<1x32x1xf32>
    %10 = vector.shape_cast %9 : vector<1x32x1xf32> to vector<32x1xf32>
    %11 = vector.broadcast %10 : vector<32x1xf32> to vector<32x256xf32>
    %12 = arith.mulf %8, %11 : vector<32x256xf32>
    %13 = arith.truncf %12 : vector<32x256xf32> to vector<32x256xbf16>
    %c0_10 = arith.constant 0 : index
    %c0_11 = arith.constant 0 : index
    %14 = vector.load %arg5[%c0_10, %c0_11] : memref<8x32xf32, #tpu.memory_space<vmem>>, vector<8x32xf32>
    %15 = arith.truncf %14 : vector<8x32xf32> to vector<8x32xbf16>
    %cst_12 = arith.constant dense<0.000000e+00> : vector<8x256xf32>
    %16 = tpu.matmul %15, %13, %cst_12 {dimension_numbers = #tpu.dot_dimension_numbers<[1], [0], [0], [1], [0, 0, 1, 1], [], []>} : vector<8x32xbf16>, vector<32x256xbf16>, vector<8x256xf32> -> vector<8x256xf32>
    %c0_13 = arith.constant 0 : index
    %c0_14 = arith.constant 0 : index
    %c0_15 = arith.constant 0 : index
    %c0_16 = arith.constant 0 : index
    %17 = vector.load %arg8[%c0_13, %c0_14, %c0_15, %c0_16] : memref<1x4x8x256xf32, #tpu.memory_space<vmem>>, vector<1x1x8x256xf32>
    %18 = vector.shape_cast %17 : vector<1x1x8x256xf32> to vector<8x256xf32>
    %19 = vector.shape_cast %16 : vector<8x256xf32> to vector<1x1x8x256xf32>
    tpu.vector_store %arg8[%c0_13, %c0_14, %c0_15, %c0_16], %19 {strides = array<i32>} : memref<1x4x8x256xf32, #tpu.memory_space<vmem>>, vector<1x1x8x256xf32>,
    %20 = arith.negf %16 : vector<8x256xf32>
    %21 = math.exp %20 : vector<8x256xf32>
    %cst_17 = arith.constant 1.000000e+00 : f32
    %22 = vector.broadcast %cst_17 : f32 to vector<8x256xf32>
    %23 = arith.addf %22, %21 : vector<8x256xf32>
    %24 = arith.divf %22, %23 : vector<8x256xf32>
    %25 = arith.truncf %24 : vector<8x256xf32> to vector<8x256xbf16>
    %cst_18 = arith.constant dense<0.000000e+00> : vector<8x32xf32>
    %26 = tpu.matmul %25, %13, %cst_18 {dimension_numbers = #tpu.dot_dimension_numbers<[1], [1], [0], [0], [0, 0, 1, 0], [], []>} : vector<8x256xbf16>, vector<32x256xbf16>, vector<8x32xf32> -> vector<8x32xf32>
    %27 = arith.truncf %26 : vector<8x32xf32> to vector<8x32xbf16>
    %c0_19 = arith.constant 0 : index
    %c0_20 = arith.constant 0 : index
    %c0_21 = arith.constant 0 : index
    %28 = vector.load %arg6[%c0_19, %c0_20, %c0_21] : memref<3x32x32xf32, #tpu.memory_space<vmem>>, vector<1x32x32xf32>
    %29 = vector.shape_cast %28 : vector<1x32x32xf32> to vector<32x32xf32>
    %30 = arith.truncf %29 : vector<32x32xf32> to vector<32x32xbf16>
    %cst_22 = arith.constant dense<0.000000e+00> : vector<8x32xf32>
    %31 = tpu.matmul %27, %30, %cst_22 {dimension_numbers = #tpu.dot_dimension_numbers<[1], [0], [0], [1], [0, 0, 1, 1], [], []>} : vector<8x32xbf16>, vector<32x32xbf16>, vector<8x32xf32> -> vector<8x32xf32>
    %c0_23 = arith.constant 0 : index
    %c0_24 = arith.constant 0 : index
    %c0_25 = arith.constant 0 : index
    %32 = vector.load %arg7[%c0_23, %c0_24, %c0_25] : memref<3x1x32xf32, #tpu.memory_space<vmem>>, vector<1x1x32xf32>
    %33 = vector.shape_cast %32 : vector<1x1x32xf32> to vector<1x32xf32>
    %34 = vector.broadcast %33 : vector<1x32xf32> to vector<8x32xf32>
    %35 = arith.addf %31, %34 : vector<8x32xf32>
    %36 = math.tanh %35 : vector<8x32xf32>
    %37 = arith.addf %14, %36 : vector<8x32xf32>
    %38 = arith.truncf %37 : vector<8x32xf32> to vector<8x32xbf16>
    %cst_26 = arith.constant dense<0.000000e+00> : vector<8x256xf32>
    %39 = tpu.matmul %38, %13, %cst_26 {dimension_numbers = #tpu.dot_dimension_numbers<[1], [0], [0], [1], [0, 0, 1, 1], [], []>} : vector<8x32xbf16>, vector<32x256xbf16>, vector<8x256xf32> -> vector<8x256xf32>
    %c0_27 = arith.constant 0 : index
    %c1 = arith.constant 1 : index
    %c0_28 = arith.constant 0 : index
    %c0_29 = arith.constant 0 : index
    %40 = vector.load %arg8[%c0_27, %c1, %c0_28, %c0_29] : memref<1x4x8x256xf32, #tpu.memory_space<vmem>>, vector<1x1x8x256xf32>
    %41 = vector.shape_cast %40 : vector<1x1x8x256xf32> to vector<8x256xf32>
    %42 = vector.shape_cast %39 : vector<8x256xf32> to vector<1x1x8x256xf32>
    tpu.vector_store %arg8[%c0_27, %c1, %c0_28, %c0_29], %42 {strides = array<i32>} : memref<1x4x8x256xf32, #tpu.memory_space<vmem>>, vector<1x1x8x256xf32>,
    %43 = arith.negf %39 : vector<8x256xf32>
    %44 = math.exp %43 : vector<8x256xf32>
    %cst_30 = arith.constant 1.000000e+00 : f32
    %45 = vector.broadcast %cst_30 : f32 to vector<8x256xf32>
    %46 = arith.addf %45, %44 : vector<8x256xf32>
    %47 = arith.divf %45, %46 : vector<8x256xf32>
    %48 = arith.truncf %47 : vector<8x256xf32> to vector<8x256xbf16>
    %cst_31 = arith.constant dense<0.000000e+00> : vector<8x32xf32>
    %49 = tpu.matmul %48, %13, %cst_31 {dimension_numbers = #tpu.dot_dimension_numbers<[1], [1], [0], [0], [0, 0, 1, 0], [], []>} : vector<8x256xbf16>, vector<32x256xbf16>, vector<8x32xf32> -> vector<8x32xf32>
    %50 = arith.truncf %49 : vector<8x32xf32> to vector<8x32xbf16>
    %c1_32 = arith.constant 1 : index
    %c0_33 = arith.constant 0 : index
    %c0_34 = arith.constant 0 : index
    %51 = vector.load %arg6[%c1_32, %c0_33, %c0_34] : memref<3x32x32xf32, #tpu.memory_space<vmem>>, vector<1x32x32xf32>
    %52 = vector.shape_cast %51 : vector<1x32x32xf32> to vector<32x32xf32>
    %53 = arith.truncf %52 : vector<32x32xf32> to vector<32x32xbf16>
    %cst_35 = arith.constant dense<0.000000e+00> : vector<8x32xf32>
    %54 = tpu.matmul %50, %53, %cst_35 {dimension_numbers = #tpu.dot_dimension_numbers<[1], [0], [0], [1], [0, 0, 1, 1], [], []>} : vector<8x32xbf16>, vector<32x32xbf16>, vector<8x32xf32> -> vector<8x32xf32>
    %c1_36 = arith.constant 1 : index
    %c0_37 = arith.constant 0 : index
    %c0_38 = arith.constant 0 : index
    %55 = vector.load %arg7[%c1_36, %c0_37, %c0_38] : memref<3x1x32xf32, #tpu.memory_space<vmem>>, vector<1x1x32xf32>
    %56 = vector.shape_cast %55 : vector<1x1x32xf32> to vector<1x32xf32>
    %57 = vector.broadcast %56 : vector<1x32xf32> to vector<8x32xf32>
    %58 = arith.addf %54, %57 : vector<8x32xf32>
    %59 = math.tanh %58 : vector<8x32xf32>
    %60 = arith.addf %37, %59 : vector<8x32xf32>
    %61 = arith.truncf %60 : vector<8x32xf32> to vector<8x32xbf16>
    %cst_39 = arith.constant dense<0.000000e+00> : vector<8x256xf32>
    %62 = tpu.matmul %61, %13, %cst_39 {dimension_numbers = #tpu.dot_dimension_numbers<[1], [0], [0], [1], [0, 0, 1, 1], [], []>} : vector<8x32xbf16>, vector<32x256xbf16>, vector<8x256xf32> -> vector<8x256xf32>
    %c0_40 = arith.constant 0 : index
    %c2 = arith.constant 2 : index
    %c0_41 = arith.constant 0 : index
    %c0_42 = arith.constant 0 : index
    %63 = vector.load %arg8[%c0_40, %c2, %c0_41, %c0_42] : memref<1x4x8x256xf32, #tpu.memory_space<vmem>>, vector<1x1x8x256xf32>
    %64 = vector.shape_cast %63 : vector<1x1x8x256xf32> to vector<8x256xf32>
    %65 = vector.shape_cast %62 : vector<8x256xf32> to vector<1x1x8x256xf32>
    tpu.vector_store %arg8[%c0_40, %c2, %c0_41, %c0_42], %65 {strides = array<i32>} : memref<1x4x8x256xf32, #tpu.memory_space<vmem>>, vector<1x1x8x256xf32>,
    %66 = arith.negf %62 : vector<8x256xf32>
    %67 = math.exp %66 : vector<8x256xf32>
    %cst_43 = arith.constant 1.000000e+00 : f32
    %68 = vector.broadcast %cst_43 : f32 to vector<8x256xf32>
    %69 = arith.addf %68, %67 : vector<8x256xf32>
    %70 = arith.divf %68, %69 : vector<8x256xf32>
    %71 = arith.truncf %70 : vector<8x256xf32> to vector<8x256xbf16>
    %cst_44 = arith.constant dense<0.000000e+00> : vector<8x32xf32>
    %72 = tpu.matmul %71, %13, %cst_44 {dimension_numbers = #tpu.dot_dimension_numbers<[1], [1], [0], [0], [0, 0, 1, 0], [], []>} : vector<8x256xbf16>, vector<32x256xbf16>, vector<8x32xf32> -> vector<8x32xf32>
    %73 = arith.truncf %72 : vector<8x32xf32> to vector<8x32xbf16>
    %c2_45 = arith.constant 2 : index
    %c0_46 = arith.constant 0 : index
    %c0_47 = arith.constant 0 : index
    %74 = vector.load %arg6[%c2_45, %c0_46, %c0_47] : memref<3x32x32xf32, #tpu.memory_space<vmem>>, vector<1x32x32xf32>
    %75 = vector.shape_cast %74 : vector<1x32x32xf32> to vector<32x32xf32>
    %76 = arith.truncf %75 : vector<32x32xf32> to vector<32x32xbf16>
    %cst_48 = arith.constant dense<0.000000e+00> : vector<8x32xf32>
    %77 = tpu.matmul %73, %76, %cst_48 {dimension_numbers = #tpu.dot_dimension_numbers<[1], [0], [0], [1], [0, 0, 1, 1], [], []>} : vector<8x32xbf16>, vector<32x32xbf16>, vector<8x32xf32> -> vector<8x32xf32>
    %c2_49 = arith.constant 2 : index
    %c0_50 = arith.constant 0 : index
    %c0_51 = arith.constant 0 : index
    %78 = vector.load %arg7[%c2_49, %c0_50, %c0_51] : memref<3x1x32xf32, #tpu.memory_space<vmem>>, vector<1x1x32xf32>
    %79 = vector.shape_cast %78 : vector<1x1x32xf32> to vector<1x32xf32>
    %80 = vector.broadcast %79 : vector<1x32xf32> to vector<8x32xf32>
    %81 = arith.addf %77, %80 : vector<8x32xf32>
    %82 = math.tanh %81 : vector<8x32xf32>
    %83 = arith.addf %60, %82 : vector<8x32xf32>
    %84 = arith.truncf %83 : vector<8x32xf32> to vector<8x32xbf16>
    %cst_52 = arith.constant dense<0.000000e+00> : vector<8x256xf32>
    %85 = tpu.matmul %84, %13, %cst_52 {dimension_numbers = #tpu.dot_dimension_numbers<[1], [0], [0], [1], [0, 0, 1, 1], [], []>} : vector<8x32xbf16>, vector<32x256xbf16>, vector<8x256xf32> -> vector<8x256xf32>
    %c0_53 = arith.constant 0 : index
    %c3 = arith.constant 3 : index
    %c0_54 = arith.constant 0 : index
    %c0_55 = arith.constant 0 : index
    %86 = vector.load %arg8[%c0_53, %c3, %c0_54, %c0_55] : memref<1x4x8x256xf32, #tpu.memory_space<vmem>>, vector<1x1x8x256xf32>
    %87 = vector.shape_cast %86 : vector<1x1x8x256xf32> to vector<8x256xf32>
    %88 = vector.shape_cast %85 : vector<8x256xf32> to vector<1x1x8x256xf32>
    tpu.vector_store %arg8[%c0_53, %c3, %c0_54, %c0_55], %88 {strides = array<i32>} : memref<1x4x8x256xf32, #tpu.memory_space<vmem>>, vector<1x1x8x256xf32>,
    return
  }
  func.func @transform_0(%arg0: i32) -> (i32, i32, i32) {
    %c0_i32 = arith.constant 0 : i32
    %c0_i32_0 = arith.constant 0 : i32
    %c0_i32_1 = arith.constant 0 : i32
    return %arg0, %c0_i32, %c0_i32_0 : i32, i32, i32
  }
  func.func @transform_1(%arg0: i32) -> (i32, i32, i32) {
    %c0_i32 = arith.constant 0 : i32
    %c0_i32_0 = arith.constant 0 : i32
    %c0_i32_1 = arith.constant 0 : i32
    return %arg0, %c0_i32, %c0_i32_0 : i32, i32, i32
  }
  func.func @transform_2(%arg0: i32) -> (i32, i32) {
    %c0_i32 = arith.constant 0 : i32
    %c0_i32_0 = arith.constant 0 : i32
    %c0_i32_1 = arith.constant 0 : i32
    return %c0_i32, %c0_i32_0 : i32, i32
  }
  func.func @transform_3(%arg0: i32) -> (i32, i32) {
    %c0_i32 = arith.constant 0 : i32
    %c0_i32_0 = arith.constant 0 : i32
    %c0_i32_1 = arith.constant 0 : i32
    return %c0_i32, %c0_i32_0 : i32, i32
  }
  func.func @transform_4(%arg0: i32) -> (i32, i32) {
    %c0_i32 = arith.constant 0 : i32
    %c0_i32_0 = arith.constant 0 : i32
    %c0_i32_1 = arith.constant 0 : i32
    return %c0_i32, %c0_i32_0 : i32, i32
  }
  func.func @transform_5(%arg0: i32) -> (i32, i32, i32) {
    %c0_i32 = arith.constant 0 : i32
    %c0_i32_0 = arith.constant 0 : i32
    %c0_i32_1 = arith.constant 0 : i32
    %c0_i32_2 = arith.constant 0 : i32
    return %c0_i32, %c0_i32_0, %c0_i32_1 : i32, i32, i32
  }
  func.func @transform_6(%arg0: i32) -> (i32, i32, i32) {
    %c0_i32 = arith.constant 0 : i32
    %c0_i32_0 = arith.constant 0 : i32
    %c0_i32_1 = arith.constant 0 : i32
    %c0_i32_2 = arith.constant 0 : i32
    return %c0_i32, %c0_i32_0, %c0_i32_1 : i32, i32, i32
  }
  func.func @transform_7(%arg0: i32) -> (i32, i32, i32, i32) {
    %c0_i32 = arith.constant 0 : i32
    %c0_i32_0 = arith.constant 0 : i32
    %c0_i32_1 = arith.constant 0 : i32
    %c0_i32_2 = arith.constant 0 : i32
    return %arg0, %c0_i32, %c0_i32_0, %c0_i32_1 : i32, i32, i32, i32
  }
}

</mosaic_0001>

<bundles_post_ra>
// kernel: tpu_custom_call.1
= control target key start
LH: loop header
LB: loop body
LE: loop exit
PB: predicated region body
PF: predicated region fallthrough
CT: control target
= control target key end

     0   :  { %12 = vsyncpa [#allocation3], 0  ;;  %s1643_s0 = inlined_call_operand.vmem [shape: f32[2,4,256], index: 0, kind: input, shape index: {}]   ;;  %s1644_s1 = inlined_call_operand.vmem [shape: f32[2,32,1], index: 1, kind: input, shape index: {}]   ;;  %s1645_s2 = inlined_call_operand.vmem [shape: f32[32,4], index: 2, kind: input, shape index: {}]   ;;  %s1646_s3 = inlined_call_operand.vmem [shape: f32[32,1], index: 3, kind: input, shape index: {}]   ;;  %s1647_s4 = inlined_call_operand.vmem [shape: f32[8,32], index: 4, kind: input, shape index: {}]   ;;  %s1648_s5 = inlined_call_operand.vmem [shape: f32[3,32,32], index: 5, kind: input, shape index: {}]   ;;  %s1649_s6 = inlined_call_operand.vmem [shape: f32[3,1,32], index: 6, kind: input, shape index: {}]   ;;  %s1650_s7 = inlined_call_operand.hbm [shape: f32[2,4,8,256], index: 7, kind: output, shape index: {}]  }
   0x1   :  { %14 = vsyncpa [#allocation3 + $0x1], 0  ;;  %s1377_s24 = smov 0   ;;  %s1379_s25 = smov 0  }
   0x2   :  { %s1381_s26 = smov 0   ;;  %s1383_s27 = smov 0  }
   0x3 LB: > { %s1398_s28 = sadd.s32 4294967295, %s1329_s27   ;;  %s1104_s29 = sadd.s32 4294967294, %s1329_s27   ;;  %s1329_s27 = sphi %s1383_s27, %s1656_s27   ;;  %s1325_s26 = sphi %s1381_s26, %s1655_s26   ;;  %s1321_s25 = sphi %s1379_s25, %s1654_s25   ;;  %s1317_s24 = sphi %s1377_s24, %s1653_s24  }
   0x4   : > { %s1402_s30 = sadd.s32 1, %s1329_s27   ;;  %s184_s8 = sadd.s32 1, %s1325_s26 }
   0x5   : > { %s181_s9 = ssub.s32 %s1329_s27, %s1402_s30  ;;  %p194_p0 = scmp.ne.s32.totalorder %s1325_s26, %s1321_s25 }
   0x6   : > { %p182_p1 = scmp.eq.s32.totalorder %s181_s9, 0  ;;  %p195_p2 = scmp.eq.s32.totalorder %s1398_s28, 1 }
   0x7   : > { %p200_p3 = scmp.ne.s32.totalorder %s1321_s25, %s1317_s24  ;;  %p201_p4 = scmp.eq.s32.totalorder %s1104_s29, 1 }
   0x8   : > { %s1413_s10 = scalar_select %p182_p1, %s1325_s26, %s184_s8  }
   0x9   : > { %p1415_p5 = por %p195_p2, %p194_p0  ;;  %p1419_p6 = por %p201_p4, %p200_p3 }
   0xa   : > { %p1107_p7 = scmp.ge.s32.totalorder %s1329_s27, 1  ;;  %p250_p8 = scmp.lt.s32.totalorder %s1329_s27, 3 }
   0xc   : > { %p251_p9 = pnand %p1107_p7, %p250_p8 }
   0xd   : > { %p287_p10 = scmp.lt.s32.totalorder (!%p251_p9), %s1398_s28, 1  ;;  %s284_s20 = sand.u32 (!%p251_p9), 1, %s1321_s25  }
   0xe   : > { %254 = sbr.rel (%p251_p9) target bundleno = 2375 (0x947), region = 48  ;;  %s1108_s21 = sshll.u32 (!%p251_p9), %s284_s20, 6 }
   0xf   : > { %s1511_s22 = scalar_lea.vmem (!%p251_p9), [#allocation2], %s1108_s21  ;;  %s1334_s13 = smov (!%p251_p9), [#allocation2]  }
  0x10   : > { %s1030_s21 = sshll.u32 (!%p251_p9), %s1511_s22, 4  ;;  %s1273_s14 = sshll.u32 (!%p251_p9), %s1334_s13, 4  ;;  %s1597_s21 = int_to_ptr.vmem [resolvable:$true] %s1030_s21  ;;  %s1274_s14 = int_to_ptr.vmem [resolvable:$false] %s1273_s14 }
  0x11   : > { %p1276_p0 = scmp.lt.s32.totalorder (!%p251_p9), %s1597_s21, %s1274_s14 }
  0x13   : > { %v1331_v0 = vmov 0.0   ;;  %v305_v1 = vld [vmem:[%s1646_s3 + $0x10] sm:$0xff]  ;;  %s288_s15 = scalar_select %p287_p10, %s1398_s28, 1  ;;  %v1332_v2 = vmov 0   ;;  %v303_v3 = vld [vmem:[%s1646_s3] sm:$0xff]  ;;  %v306_v4 = vld [vmem:[%s1646_s3 + $0x18] sm:$0xff] }
  0x14   : > { %411 = vmatprep.mubr.f32.mxu0 %v1331_v0  ;;  %1236 = vset.pattern.permute.xlu0 %v1332_v2  ;;  %v304_v5 = vld [vmem:[%s1646_s3 + $0x8] sm:$0xff]  ;;  %vm342_vm0 = vcmask 1043456   ;;  %v299_v8 = vld [vmem:[%s1645_s2] sm:$0xff]  ;;  %vm329_vm1 = vcmask 31744   ;;  %v301_v14 = vld [vmem:[%s1645_s2 + $0x10] sm:$0xff]  ;;  %vm482_vm2 = vcmask 261120  }
  0x15   : > { %1237 = vset.pattern.permute.xlu1 %v1332_v2  ;;  %319 = vperm.xlu0 %1236, %v305_v1   ;;  %s1156_s18 = sshll.u32 %s288_s15, 3  ;;  %s1157_s23 = sshll.u32 %s288_s15, 5  ;;  %v300_v11 = vld [vmem:[%s1645_s2 + $0x8] sm:$0xff]  ;;  %v302_v15 = vld [vmem:[%s1645_s2 + $0x18] sm:$0xff]  ;;  %v1481_v59 = vld [vmem:[%s1647_s4] sm:$0xff]  ;;  %vm1333_vm3 = vmmov 0  }
  0x16   : > { %309 = vperm.xlu1 %1237, %v303_v3   ;;  %518 = vmatprep.mubr.bf16.mxu1 %v1332_v2  ;;  %s291_s9 = scalar_lea.vmem %s1643_s0, %s1156_s18  ;;  %s296_s16 = scalar_lea.vmem %s1644_s1, %s1157_s23  ;;  %v586_v60 = vld [vmem:[%s1648_s5 + $0x10] sm:$0xff]  ;;  %v587_v61 = vld [vmem:[%s1648_s5 + $0x18] sm:$0xff]  ;;  %v481_v63 = vpack.c.bf16 %v1481_v59, %v1481_v59  ;;  %v584_v3 = vld [vmem:[%s1648_s5] sm:$0xff] }
  0x17   : > { %v298_v6 = vld [vmem:[%s291_s9] sm:$0xff]  ;;  %v446_v9 = vld [vmem:[%s296_s16 + $0x10] sm:$0xff]  ;;  %v447_v10 = vld [vmem:[%s296_s16 + $0x18] sm:$0xff]  ;;  %v589_v1 = vpack.c.bf16 %v587_v61, %v586_v60  ;;  %s1158_s18 = sshll.u32 %s1398_s28, 10  ;;  %s1603_s9 = scalar_lea.sflag [#allocation3], %s284_s20 }
  0x18   : > { %v328_v7 = vcombine.high %v298_v6, %v298_v6  ;;  %v444_v12 = vld [vmem:[%s296_s16] sm:$0xff]  ;;  %v445_v13 = vld [vmem:[%s296_s16 + $0x8] sm:$0xff]  ;;  %s1595_s8 = scalar_lea.hbm %s1650_s7, %s1158_s18  ;;  %s1269_s28 = scalar_lea.vmem %s1597_s21, 1024 }
  0x19   : > { %324 = vperm.xlu0 %1236, %v306_v4   ;;  %v585_v4 = vld [vmem:[%s1648_s5 + $0x8] sm:$0xff]  ;;  %p1270_p11 = scmp.ne.s32.totalorder %s1597_s21, %s1269_s28  ;;  %s1275_s16 = scalar_lea.vmem %s1274_s14, 2048 }
  0x1a   : > { %314 = vperm.xlu1 %1237, %v304_v5   ;;  %1113 = vmatprep.subr.msk.mxu0 %vm342_vm0, %v328_v7  ;;  %v588_v5 = vpack.c.bf16 %v585_v4, %v584_v3  ;;  %p1277_p1 = scmp.lt.s32.totalorder %s1275_s16, %s1269_s28 }
  0x1b   : > { %1114 = vmatpush1.msk.msra.mxu0 %vm342_vm0, %v298_v6  ;;  %p1271_p12 = pnand %p1270_p11, %p1415_p5 }
  0x1c   : > { %1115 = vmatmul.mubr.msk.f32.vlgmr.msra.gmra.mxu0 %vm329_vm1, %v299_v8  ;;  %p1278_p2 = por %p1277_p1, %p1276_p0 }
  0x1d   : > { %460 = vperm.xlu0 %1236, %v446_v9   ;;  %417 = vmatprep.mubr.f32.mxu0 %v1331_v0  ;;  %p1272_p13 = pneg %p1271_p12 }
  0x1e   : > { %465 = vperm.xlu1 %1237, %v447_v10  }
  0x1f   : > { %p1279_p3 = pnand %p1278_p2, %p1272_p13 }
  0x20   : > { %1116 = vmatmul.mubr.msk.f32.gmra.mxu0 %vm329_vm1, %v300_v11 }
  0x21   : > { %450 = vperm.xlu0 %1236, %v444_v12   ;;  %423 = vmatprep.mubr.f32.mxu0 %v1331_v0 }
  0x22   : > { %455 = vperm.xlu1 %1237, %v445_v13  }
  0x24   : > { %1117 = vmatmul.mubr.msk.f32.gmra.mxu0 %vm329_vm1, %v301_v14 }
  0x25   : > { %429 = vmatprep.mubr.f32.mxu0 %v1331_v0 }
  0x28   : > { %1118 = vmatmul.mubr.msk.f32.gmra.mxu0 %vm329_vm1, %v302_v15 }
  0x90   : > { %v320_v18 = vpop.permute.xlu0 %319 }
  0x91   : > { %v310_v16 = vpop.permute.xlu1 %309 }
  0x94   : > { %v325_v23 = vpop.permute.xlu0 %324 }
  0x95   : > { %v315_v21 = vpop.permute.xlu1 %314 }
  0x98   : > { %v461_v33 = vpop.permute.xlu0 %460 }
  0x99   : > { %v466_v28 = vpop.permute.xlu1 %465 }
  0x9c   : > { %v451_v51 = vpop.permute.xlu0 %450 }
  0x9d   : > { %v456_v45 = vpop.permute.xlu1 %455 }
  0xdc   : > { %v413_v17 = vpop.f32.mrf.mxu0 }
  0xdd   : > { %v414_v40 = vadd.f32 %v413_v17, %v310_v16 }
  0xde   : > { %v415_v19 = vpop.f32.mrf.mxu0 }
  0xdf   : > { %v416_v31 = vadd.f32 %v415_v19, %v310_v16  ;;  %v436_v50 = vmax.f32 %v414_v40, 0.0 }
  0xe0   : > { %v419_v20 = vpop.f32.mrf.mxu0 }
  0xe1   : > { %v420_v34 = vadd.f32 %v419_v20, %v315_v21  ;;  %v437_v42 = vmax.f32 %v416_v31, 0.0  ;;  %v468_v58 = vmul.f32 %v451_v51, %v436_v50  ;;  %v1131_v31 = vld [vmem:[%s1648_s5 + $0x30] sm:$0xff] }
  0xe2   : > { %v421_v22 = vpop.f32.mrf.mxu0 }
  0xe3   : > { %v422_v26 = vadd.f32 %v421_v22, %v315_v21  ;;  %v438_v44 = vmax.f32 %v420_v34, 0.0  ;;  %v469_v53 = vmul.f32 %v451_v51, %v437_v42 }
  0xe4   : > { %v425_v24 = vpop.f32.mrf.mxu0 }
  0xe5   : > { %v426_v29 = vadd.f32 %v425_v24, %v320_v18  ;;  %v439_v36 = vmax.f32 %v422_v26, 0.0  ;;  %v470_v55 = vmul.f32 %v456_v45, %v438_v44 }
  0xe6   : > { %v427_v25 = vpop.f32.mrf.mxu0 }
  0xe7   : > { %v428_v27 = vadd.f32 %v427_v25, %v320_v18  ;;  %v440_v41 = vmax.f32 %v426_v29, 0.0  ;;  %v471_v47 = vmul.f32 %v456_v45, %v439_v36  ;;  %v1491_v62 = vpack.c.bf16 %v470_v55, %v468_v58  ;;  %v1122_v25 = vld [vmem:[%s1649_s6] ss:$0 sm:$0xff] }
  0xe8   : > { %v431_v30 = vpop.f32.mrf.mxu0 }
  0xe9   : > { %v432_v32 = vadd.f32 %v431_v30, %v325_v23  ;;  %v441_v37 = vmax.f32 %v428_v27, 0.0  ;;  %v472_v52 = vmul.f32 %v461_v33, %v440_v41  ;;  %v1472_v57 = vpack.c.bf16 %v471_v47, %v469_v53 }
  0xea   : > { %v433_v35 = vpop.f32.mrf.mxu0 }
  0xeb   : > { %v442_v38 = vmax.f32 %v432_v32, 0.0  ;;  %v434_v39 = vadd.f32 %v433_v35, %v325_v23  ;;  %v473_v48 = vmul.f32 %v461_v33, %v441_v37  ;;  %v1132_v32 = vld [vmem:[%s1648_s5 + $0x38] sm:$0xff]  ;;  %v1129_v37 = vld [vmem:[%s1648_s5 + $0x20] sm:$0xff] }
  0xec   : > { %v751_v35 = vpack.c.bf16 %v1132_v32, %v1131_v31 }
  0xed   : > { %v443_v43 = vmax.f32 %v434_v39, 0.0  ;;  %v474_v46 = vmul.f32 %v466_v28, %v442_v38  ;;  %v1130_v38 = vld [vmem:[%s1648_s5 + $0x28] sm:$0xff] }
  0xee   : > { %v750_v39 = vpack.c.bf16 %v1130_v38, %v1129_v37 }
  0xef   : > { %v475_v49 = vmul.f32 %v466_v28, %v443_v43  ;;  %v1470_v56 = vpack.c.bf16 %v474_v46, %v472_v52 }
  0xf1   : > { %v1468_v54 = vpack.c.bf16 %v475_v49, %v473_v48 }
  0xf3   : > { %498 = vmatprep.subr.bf16.mxu1 %v1468_v54  ;;  %555 = vmatprep.subr.bf16.mxu0 %v1468_v54 }
  0xf4   : > { %499 = vmatpush1.bf16.msra.mxu1 %v1470_v56  ;;  %556 = vmatpush1.bf16.xpose.msra.mxu0 %v1470_v56 }
  0xf5   : > { %500 = vmatprep.subr.bf16.mxu1 %v1472_v57  ;;  %557 = vmatprep.subr.bf16.mxu0 %v1472_v57 }
  0xf8   : > { %501 = vmatpush1.bf16.msra.mxu1 %v1491_v62 }
  0xf9   : > { %1168 = vmatprep.subr.bf16.mxu1 %v1331_v0 }
  0xfb   : > { %1119 = vmatmul.mubr.msk.bf16.vlgmr.msra.gmra.mxu1 %vm482_vm2, %v481_v63  ;;  %v1134_v63 = vld [vmem:[%s1649_s6 + $0x1] ss:$0 sm:$0xff] }
  0xfc   : > { %558 = vmatpush1.bf16.xpose.msra.mxu0 %v1491_v62  ;;  %1169 = vmatpush3.bf16.msra.mxu1 %v589_v1 }
  0xfd   : > { %716 = vmatprep.subr.bf16.mxu0 %v1468_v54  ;;  %1170 = vmatprep.subr.bf16.mxu1 %v1331_v0 }
  0xfe   : > { %1172 = vmatprep.mubr.msk.bf16.mxu1 %vm1333_vm3, %v1331_v0 }
 0x100   : > { %1171 = vmatpush3.bf16.msra.mxu1 %v588_v5 }
 0x101   : > { %658 = vmatprep.subr.bf16.mxu1 %v1468_v54 }
 0x1bb   : > { %v520_v6 = vpop.f32.mrf.mxu1 }
 0x1bc   : > { %527 = vst [vmem:[%s1511_s22] sm:$0xff] %v520_v6  ;;  %v1120_v7 = vmul.f32 -1.442695, %v520_v6 }
 0x1bd   : > { %v522_v8 = vpop.f32.mrf.mxu1 }
 0x1be   : > { %1239 = vpow2.f32 %v1120_v7  ;;  %528 = vst [vmem:[%s1511_s22 + $0x8] sm:$0xff] %v522_v8  ;;  %v1121_v9 = vmul.f32 -1.442695, %v522_v8  ;;  %v1143_v7 = vld [vmem:[%s1648_s5 + $0x50] sm:$0xff]  ;;  %v1144_v8 = vld [vmem:[%s1648_s5 + $0x58] sm:$0xff] }
 0x1bf   : > { %v524_v10 = vpop.f32.mrf.mxu1 }
 0x1c0   : > { %1241 = vpow2.f32 %v1121_v9 }
 0x1c1   : > { %v525_v11 = vpop.f32.mrf.mxu1 }
 0x1c2   : > { %v914_v11 = vpack.c.bf16 %v1144_v8, %v1143_v7 }
 0x1cb   : > { %v1240_v12 = vpop.eup %1239 }
 0x1cc   : > { %v535_v13 = vadd.f32 1.0, %v1240_v12 }
 0x1cd   : > { %v1242_v14 = vpop.eup %1241 }
 0x1ce   : > { %v536_v15 = vadd.f32 1.0, %v1242_v14  ;;  %1243 = vrcp.f32 %v535_v13  ;;  %v1141_v13 = vld [vmem:[%s1648_s5 + $0x40] sm:$0xff]  ;;  %v1142_v14 = vld [vmem:[%s1648_s5 + $0x48] sm:$0xff] }
 0x1d0   : > { %1245 = vrcp.f32 %v536_v15  ;;  %v913_v15 = vpack.c.bf16 %v1142_v14, %v1141_v13 }
 0x1db   : > { %v1244_v16 = vpop.eup %1243 }
 0x1dc   : > { %v541_v19 = vpack.c.bf16 %v1244_v16, %v1244_v16 }
 0x1dd   : > { %v1246_v17 = vpop.eup %1245 }
 0x1de   : > { %v542_v18 = vpack.c.bf16 %v1246_v17, %v1246_v17 }
 0x1e0   : > { %575 = vmatprep.mubr.bf16.mxu0 %v542_v18 }
 0x1e1   : > { %576 = vmatmul.mubr.bf16.vlgmr.msra.gmra.mxu0 %v541_v19 }
 0x1e2   : > { %717 = vmatpush1.bf16.xpose.msra.mxu0 %v1470_v56 }
 0x1e3   : > { %718 = vmatprep.subr.bf16.mxu0 %v1472_v57 }
 0x1ea   : > { %719 = vmatpush1.bf16.xpose.msra.mxu0 %v1491_v62 }
 0x1eb   : > { %879 = vmatprep.subr.bf16.mxu0 %v1468_v54 }
 0x2a1   : > { %v577_v20 = vpop.f32.mrf.mxu0 }
 0x2a2   : > { %v583_v21 = vpack.c.bf16 %v577_v20, %v577_v20 }
 0x2a3   : > { %v579_v22 = vpop.f32.mrf.mxu0 }
 0x2a4   : > { %1173 = vmatmul.mubr.msk.bf16.vlgmr.msra.gmra.mxu1 %vm482_vm2, %v583_v21 }
 0x2a5   : > { %659 = vmatpush1.bf16.msra.mxu1 %v1470_v56  ;;  %v580_v23 = vpop.f32.mrf.mxu0  ;;  %678 = vmatprep.mubr.bf16.mxu1 %v1332_v2 }
 0x2a6   : > { %660 = vmatprep.subr.bf16.mxu1 %v1472_v57 }
 0x2a7   : > { %v581_v24 = vpop.f32.mrf.mxu0 }
 0x2a9   : > { %661 = vmatpush1.bf16.msra.mxu1 %v1491_v62 }
 0x2aa   : > { %1176 = vmatprep.subr.bf16.mxu1 %v1331_v0 }
 0x364   : > { %v634_v26 = vpop.f32.mrf.mxu1 }
 0x365   : > { %v635_v27 = vadd.f32 %v1122_v25, %v634_v26 }
 0x366   : > { %v1174_v28 = vpop.f32.mrf.mxu1 }
 0x367   : > { %1247 = vtanh.f32 %v635_v27 }
 0x368   : > { %v637_v29 = vpop.f32.mrf.mxu1 }
 0x36a   : > { %v1175_v30 = vpop.f32.mrf.mxu1 }
 0x374   : > { %v1248_v33 = vpop.eup %1247 }
 0x375   : > { %v641_v34 = vadd.f32 %v1248_v33, %v1481_v59  ;;  %v1146_v33 = vld [vmem:[%s1649_s6 + $0x2] ss:$0 sm:$0xff] }
 0x377   : > { %v642_v36 = vpack.c.bf16 %v641_v34, %v641_v34 }
 0x379   : > { %1124 = vmatmul.mubr.msk.bf16.vlgmr.msra.gmra.mxu1 %vm482_vm2, %v642_v36 }
 0x37a   : > { %1177 = vmatpush3.bf16.msra.mxu1 %v751_v35  ;;  %1180 = vmatprep.mubr.msk.bf16.mxu1 %vm1333_vm3, %v1331_v0 }
 0x37b   : > { %1178 = vmatprep.subr.bf16.mxu1 %v1331_v0 }
 0x37e   : > { %1179 = vmatpush3.bf16.msra.mxu1 %v750_v39 }
 0x37f   : > { %821 = vmatprep.subr.bf16.mxu1 %v1468_v54 }
 0x439   : > { %v680_v40 = vpop.f32.mrf.mxu1 }
 0x43a   : > { %1125 = vst [vmem:[%s1511_s22 + $0x10] sm:$0xff] %v680_v40  ;;  %v1127_v41 = vmul.f32 -1.442695, %v680_v40 }
 0x43b   : > { %v682_v42 = vpop.f32.mrf.mxu1 }
 0x43c   : > { %1249 = vpow2.f32 %v1127_v41  ;;  %1126 = vst [vmem:[%s1511_s22 + $0x18] sm:$0xff] %v682_v42  ;;  %v1128_v43 = vmul.f32 -1.442695, %v682_v42 }
 0x43d   : > { %v684_v44 = vpop.f32.mrf.mxu1 }
 0x43e   : > { %1251 = vpow2.f32 %v1128_v43 }
 0x43f   : > { %v685_v45 = vpop.f32.mrf.mxu1 }
 0x449   : > { %v1250_v46 = vpop.eup %1249 }
 0x44a   : > { %v696_v47 = vadd.f32 1.0, %v1250_v46 }
 0x44b   : > { %v1252_v48 = vpop.eup %1251 }
 0x44c   : > { %v697_v49 = vadd.f32 1.0, %v1252_v48  ;;  %1253 = vrcp.f32 %v696_v47 }
 0x44e   : > { %1255 = vrcp.f32 %v697_v49 }
 0x459   : > { %v1254_v50 = vpop.eup %1253 }
 0x45a   : > { %v702_v53 = vpack.c.bf16 %v1254_v50, %v1254_v50 }
 0x45b   : > { %v1256_v51 = vpop.eup %1255 }
 0x45c   : > { %v703_v52 = vpack.c.bf16 %v1256_v51, %v1256_v51 }
 0x45e   : > { %736 = vmatprep.mubr.bf16.mxu0 %v703_v52 }
 0x45f   : > { %737 = vmatmul.mubr.bf16.vlgmr.msra.gmra.mxu0 %v702_v53 }
 0x460   : > { %880 = vmatpush1.bf16.xpose.msra.mxu0 %v1470_v56 }
 0x461   : > { %881 = vmatprep.subr.bf16.mxu0 %v1472_v57 }
 0x468   : > { %882 = vmatpush1.bf16.xpose.msra.mxu0 %v1491_v62 }
 0x51f   : > { %v738_v55 = vpop.f32.mrf.mxu0 }
 0x520   : > { %v744_v58 = vpack.c.bf16 %v738_v55, %v738_v55 }
 0x521   : > { %v740_v59 = vpop.f32.mrf.mxu0 }
 0x522   : > { %1181 = vmatmul.mubr.msk.bf16.vlgmr.msra.gmra.mxu1 %vm482_vm2, %v744_v58 }
 0x523   : > { %822 = vmatpush1.bf16.msra.mxu1 %v1470_v56  ;;  %v741_v60 = vpop.f32.mrf.mxu0  ;;  %841 = vmatprep.mubr.bf16.mxu1 %v1332_v2 }
 0x524   : > { %823 = vmatprep.subr.bf16.mxu1 %v1472_v57 }
 0x525   : > { %v742_v61 = vpop.f32.mrf.mxu0 }
 0x527   : > { %824 = vmatpush1.bf16.msra.mxu1 %v1491_v62 }
 0x528   : > { %1184 = vmatprep.subr.bf16.mxu1 %v1331_v0 }
 0x5e2   : > { %v797_v1 = vpop.f32.mrf.mxu1 }
 0x5e3   : > { %v798_v3 = vadd.f32 %v1134_v63, %v797_v1 }
 0x5e4   : > { %v1182_v4 = vpop.f32.mrf.mxu1 }
 0x5e5   : > { %1257 = vtanh.f32 %v798_v3 }
 0x5e6   : > { %v800_v5 = vpop.f32.mrf.mxu1 }
 0x5e8   : > { %v1183_v6 = vpop.f32.mrf.mxu1 }
 0x5f2   : > { %v1258_v9 = vpop.eup %1257 }
 0x5f3   : > { %v804_v10 = vadd.f32 %v1258_v9, %v641_v34 }
 0x5f5   : > { %v805_v12 = vpack.c.bf16 %v804_v10, %v804_v10 }
 0x5f7   : > { %1136 = vmatmul.mubr.msk.bf16.vlgmr.msra.gmra.mxu1 %vm482_vm2, %v805_v12 }
 0x5f8   : > { %1185 = vmatpush3.bf16.msra.mxu1 %v914_v11  ;;  %1188 = vmatprep.mubr.msk.bf16.mxu1 %vm1333_vm3, %v1331_v0 }
 0x5f9   : > { %1186 = vmatprep.subr.bf16.mxu1 %v1331_v0 }
 0x5fc   : > { %1187 = vmatpush3.bf16.msra.mxu1 %v913_v15 }
 0x5fd   : > { %984 = vmatprep.subr.bf16.mxu1 %v1468_v54 }
 0x6b7   : > { %v843_v16 = vpop.f32.mrf.mxu1 }
 0x6b8   : > { %1137 = vst [vmem:[%s1511_s22 + $0x20] sm:$0xff] %v843_v16  ;;  %v1139_v17 = vmul.f32 -1.442695, %v843_v16 }
 0x6b9   : > { %v845_v18 = vpop.f32.mrf.mxu1 }
 0x6ba   : > { %1259 = vpow2.f32 %v1139_v17  ;;  %1138 = vst [vmem:[%s1511_s22 + $0x28] sm:$0xff] %v845_v18  ;;  %v1140_v19 = vmul.f32 -1.442695, %v845_v18 }
 0x6bb   : > { %v847_v20 = vpop.f32.mrf.mxu1 }
 0x6bc   : > { %1261 = vpow2.f32 %v1140_v19 }
 0x6bd   : > { %v848_v21 = vpop.f32.mrf.mxu1 }
 0x6c7   : > { %v1260_v22 = vpop.eup %1259 }
 0x6c8   : > { %v859_v23 = vadd.f32 1.0, %v1260_v22 }
 0x6c9   : > { %v1262_v24 = vpop.eup %1261 }
 0x6ca   : > { %v860_v25 = vadd.f32 1.0, %v1262_v24  ;;  %1263 = vrcp.f32 %v859_v23 }
 0x6cc   : > { %1265 = vrcp.f32 %v860_v25 }
 0x6d7   : > { %v1264_v0 = vpop.eup %1263 }
 0x6d8   : > { %v865_v54 = vpack.c.bf16 %v1264_v0, %v1264_v0 }
 0x6d9   : > { %v1266_v26 = vpop.eup %1265 }
 0x6da   : > { %v866_v27 = vpack.c.bf16 %v1266_v26, %v1266_v26 }
 0x6dc   : > { %899 = vmatprep.mubr.bf16.mxu0 %v866_v27 }
 0x6dd   : > { %900 = vmatmul.mubr.bf16.vlgmr.msra.gmra.mxu0 %v865_v54 }
 0x79d   : > { %v901_v28 = vpop.f32.mrf.mxu0 }
 0x79e   : > { %v907_v29 = vpack.c.bf16 %v901_v28, %v901_v28 }
 0x79f   : > { %v903_v30 = vpop.f32.mrf.mxu0 }
 0x7a0   : > { %1189 = vmatmul.mubr.msk.bf16.vlgmr.msra.gmra.mxu1 %vm482_vm2, %v907_v29 }
 0x7a1   : > { %985 = vmatpush1.bf16.msra.mxu1 %v1470_v56  ;;  %v904_v31 = vpop.f32.mrf.mxu0  ;;  %1004 = vmatprep.mubr.bf16.mxu1 %v1332_v2 }
 0x7a2   : > { %986 = vmatprep.subr.bf16.mxu1 %v1472_v57 }
 0x7a3   : > { %v905_v32 = vpop.f32.mrf.mxu0 }
 0x7a5   : > { %987 = vmatpush1.bf16.msra.mxu1 %v1491_v62 }
 0x860   : > { %v960_v34 = vpop.f32.mrf.mxu1 }
 0x861   : > { %v961_v35 = vadd.f32 %v1146_v33, %v960_v34 }
 0x862   : > { %v1190_v36 = vpop.f32.mrf.mxu1 }
 0x863   : > { %1267 = vtanh.f32 %v961_v35 }
 0x864   : > { %v963_v56 = vpop.f32.mrf.mxu1 }
 0x866   : > { %v1191_v37 = vpop.f32.mrf.mxu1 }
 0x870   : > { %v1268_v2 = vpop.eup %1267 }
 0x871   : > { %v967_v38 = vadd.f32 %v1268_v2, %v804_v10 }
 0x873   : > { %v968_v57 = vpack.c.bf16 %v967_v38, %v967_v38 }
 0x875   : > { %1148 = vmatmul.mubr.msk.bf16.vlgmr.msra.gmra.mxu1 %vm482_vm2, %v968_v57 }
 0x935   : > { %v1006_v62 = vpop.f32.mrf.mxu1 }
 0x936   : > { %1149 = vst [vmem:[%s1511_s22 + $0x30] sm:$0xff] %v1006_v62 }
 0x937   : > { %v1008_v39 = vpop.f32.mrf.mxu1 }
 0x938   : > { %1150 = vst [vmem:[%s1511_s22 + $0x38] sm:$0xff] %v1008_v39 }
 0x939   : > { %v1010_v40 = vpop.f32.mrf.mxu1 }
 0x93a   : > { %1282 = shalt.err (!%p1279_p3)
}
 0x93b   : > { %s1283_s20 = scalar_lea.hbm %s1595_s8, 1024  ;;  %s1287_s19 = scalar_lea.hbm %s1650_s7, 2048 }
 0x93c   : > { %p1284_p4 = scmp.ne.s32.totalorder %s1595_s8, %s1283_s20  ;;  %p1288_p9 = scmp.lt.s32.totalorder %s1595_s8, %s1650_s7 }
 0x93d   : > { %p1289_p10 = scmp.lt.s32.totalorder %s1287_s19, %s1283_s20 }
 0x93e   : > { %p1285_p7 = pnand %p1284_p4, %p1415_p5 }
 0x93f   : > { %p1290_p11 = por %p1289_p10, %p1288_p9 }
 0x940   : > { %p1286_p8 = pneg %p1285_p7 }
 0x942   : > { %p1291_p12 = pnand %p1290_p11, %p1286_p8 }
 0x944   : > { %1294 = shalt.err (!%p1291_p12)
}
 0x945   : > { %s1335_s23 = smov 256   ;;  %s1336_s29 = smov 16   ;;  %v1011_v41 = vpop.f32.mrf.mxu1 }
 0x946   : > { %1192 = dma.vmem_to_hbm [thread:$0]  (%p1415_p5), %s1597_s21, 1024, %s1595_s8, %s1603_s9, %s1335_s23, %s1335_s23, %s1336_s29  }
 0x947 PF: > { %p1198_p13 = scmp.ge.s32.totalorder %s1329_s27, 2  ;;  %s1045_s28 = sand.u32 1, %s1317_s24  }
 0x948   : > { %s1046_s13 = scalar_lea.sflag [#allocation3], %s1045_s28 }
 0x949   : > { %p1195_p0 = pnand %p1198_p13, %p1419_p6 }
 0x94b   : > { %p1196_p1 = pneg %p1195_p0 }
 0x94d   : > { %1312 = dma.done.wait (%p1196_p1), %s1046_s13, 1024  }
 0x94e   : > { %1314 = vsyncadd (%p1196_p1), %s1046_s13, 4294966272  ;;  %p17_p2 = scmp.ge.s32.totalorder %s1402_s30, 4   ;;  %s1653_s24 = smov %s1321_s25 }
 0x94f   : > { %s1654_s25 = smov %s1325_s26  ;;  %s1655_s26 = smov %s1413_s10 }
 0x950   : > { %s1656_s27 = smov %s1402_s30  ;;  %19 = sbr.rel (!%p17_p2) target bundleno = 3 (0x3), region = 93 }
 0x955   :  { %1051 = vsyncpa [#allocation3], 1 }
 0x956   :  { %1053 = vsyncpa [#allocation3 + $0x1], 1 }

</bundles_post_ra>
